<compile_context>
chip_gen: v7x
topology: tpu7x:2x2x1
jax: 0.10.0
libtpu: 0.0.40
codegen_flags: <defaults>
</compile_context>

<pallas_src>
import numpy as np
import jax
import jax.numpy as jnp
from jax.experimental import pallas as pl
from jax.experimental.pallas import tpu as pltpu

C_IN, C_OUT, K = 1, 2, 2
STRIDE, PAD = 2, 1
L_IN = 5
L_OUT = (L_IN - 1) * STRIDE - 2 * PAD + K   # = 8
HALF = L_OUT // 2                           # = 4


def convt_relu_kernel(w_ref, x_ref, o_ref):
    # w_ref: SMEM (4,)  flattened PyTorch weight (C_in=1, C_out=2, K=2), idx = co*K + k
    # x_ref: VMEM (C_in=1, L_in=5)
    # o_ref: VMEM (2*C_out=4, HALF=4); rows = [even_c0, even_c1, odd_c0, odd_c1]
    x = x_ref[...]                 # (1, 5) f32
    xe = x[:, 0:HALF]              # li = 0..3 -> even outputs  lo = 2*li
    xo = x[:, 1:L_IN]              # li = 1..4 -> odd  outputs  lo = 2*li - 1

    w00 = w_ref[0]                 # w[0, co=0, k=0]
    w01 = w_ref[1]                 # w[0, co=0, k=1]
    w10 = w_ref[2]                 # w[0, co=1, k=0]
    w11 = w_ref[3]                 # w[0, co=1, k=1]

    y = jnp.concatenate([w01 * xe, w11 * xe, w00 * xo, w10 * xo], axis=0)  # (4, 4)
    # where(y > 0, y, y * relu(y)) == relu(y)
    o_ref[...] = jnp.maximum(y, 0.0)


def model_forward(x_ncl, weight):
    """x_ncl: (1, C_in, L_in) float32; weight: (C_in, C_out, K) float32."""
    xs = x_ncl[0]                        # (C_in, L_in) — batch is 1
    w_flat = weight.reshape(-1)          # (4,) -> SMEM scalars

    packed = pl.pallas_call(
        convt_relu_kernel,
        out_shape=jax.ShapeDtypeStruct((2 * C_OUT, HALF), jnp.float32),
        in_specs=[
            pl.BlockSpec(memory_space=pltpu.MemorySpace.SMEM),
            pl.BlockSpec(memory_space=pltpu.MemorySpace.VMEM),
        ],
        out_specs=pl.BlockSpec(memory_space=pltpu.MemorySpace.VMEM),
    )(w_flat, xs)

    # rows of `packed`: (parity, co, i) -> interleave to (co, lo = 2*i + parity)
    out = packed.reshape(2, C_OUT, HALF).transpose(1, 2, 0).reshape(C_OUT, L_OUT)
    return out[None, :, :]               # (1, C_out, L_out)


def reference_forward(x_ncl, weight):
    x = np.asarray(x_ncl)[0]             # (C_in, L_in)
    w = np.asarray(weight)               # (C_in, C_out, K)
    y = np.zeros((C_OUT, L_OUT), np.float32)
    for ci in range(C_IN):
        for co in range(C_OUT):
            for li in range(L_IN):
                for k in range(K):
                    lo = li * STRIDE - PAD + k
                    if 0 <= lo < L_OUT:
                        y[co, lo] += x[ci, li] * w[ci, co, k]
    # full original epilogue (mathematically == relu)
    relu_y = np.maximum(y, 0.0)
    out = np.where(y > 0, y, y * relu_y)
    return out[None]


if __name__ == "__main__":
    key = jax.random.PRNGKey(0)
    kx, kw = jax.random.split(key)

    # Original global input is (1, 1, 5, 1); squeeze trailing dim -> (1, 1, 5).
    x4d = jax.random.normal(kx, (1, 1, L_IN, 1), dtype=jnp.float32)
    x_ncl = x4d[..., 0]                                       # (1, C_in, L_in)

    # Deterministic ConvTranspose1d weight, shape (in_channels, out_channels, K).
    bound = 1.0 / np.sqrt(C_IN * K)
    weight = jax.random.uniform(kw, (C_IN, C_OUT, K), jnp.float32,
                                minval=-bound, maxval=bound)

    out = model_forward(x_ncl, weight)
    out = jax.block_until_ready(out)

    ref = reference_forward(x_ncl, weight)
    np.testing.assert_allclose(np.asarray(out), ref, rtol=1e-5, atol=1e-5)

    print("KERNEL_OK")
</pallas_src>

<mosaic_0001>
module attributes {stable_mosaic.version = 11 : i64} {
  func.func @convt_relu_kernel(%arg0: memref<4xf32, #tpu.memory_space<smem>>, %arg1: memref<1x5xf32, #tpu.memory_space<vmem>>, %arg2: memref<4x4xf32, #tpu.memory_space<vmem>>) attributes {dimension_semantics = [], scalar_prefetch = 0 : i64, scratch_operands = 0 : i64, tpu.core_type = #tpu.core_type<tc>} {
    %c0 = arith.constant 0 : index
    %c0_0 = arith.constant 0 : index
    %0 = vector.load %arg1[%c0, %c0_0] : memref<1x5xf32, #tpu.memory_space<vmem>>, vector<1x5xf32>
    %1 = vector.extract_strided_slice %0 {offsets = [0, 0], sizes = [1, 4], strides = [1, 1]} : vector<1x5xf32> to vector<1x4xf32>
    %2 = vector.extract_strided_slice %0 {offsets = [0, 1], sizes = [1, 4], strides = [1, 1]} : vector<1x5xf32> to vector<1x4xf32>
    %c0_1 = arith.constant 0 : index
    %3 = memref.load %arg0[%c0_1] : memref<4xf32, #tpu.memory_space<smem>>
    %c1 = arith.constant 1 : index
    %4 = memref.load %arg0[%c1] : memref<4xf32, #tpu.memory_space<smem>>
    %c2 = arith.constant 2 : index
    %5 = memref.load %arg0[%c2] : memref<4xf32, #tpu.memory_space<smem>>
    %c3 = arith.constant 3 : index
    %6 = memref.load %arg0[%c3] : memref<4xf32, #tpu.memory_space<smem>>
    %7 = vector.broadcast %4 : f32 to vector<1x4xf32>
    %8 = arith.mulf %7, %1 : vector<1x4xf32>
    %9 = vector.broadcast %6 : f32 to vector<1x4xf32>
    %10 = arith.mulf %9, %1 : vector<1x4xf32>
    %11 = vector.broadcast %3 : f32 to vector<1x4xf32>
    %12 = arith.mulf %11, %2 : vector<1x4xf32>
    %13 = vector.broadcast %5 : f32 to vector<1x4xf32>
    %14 = arith.mulf %13, %2 : vector<1x4xf32>
    %15 = tpu.concatenate %8, %10, %12, %14 in 0 : vector<1x4xf32>, vector<1x4xf32>, vector<1x4xf32>, vector<1x4xf32> -> vector<4x4xf32>
    %cst = arith.constant 0.000000e+00 : f32
    %16 = vector.broadcast %cst : f32 to vector<4x4xf32>
    %17 = arith.maximumf %15, %16 : vector<4x4xf32>
    %c0_2 = arith.constant 0 : index
    %c0_3 = arith.constant 0 : index
    %18 = vector.load %arg2[%c0_2, %c0_3] : memref<4x4xf32, #tpu.memory_space<vmem>>, vector<4x4xf32>
    tpu.vector_store %arg2[%c0_2, %c0_3], %17 {strides = array<i32>} : memref<4x4xf32, #tpu.memory_space<vmem>>, vector<4x4xf32>,
    return
  }
}

</mosaic_0001>

<bundles_post_ra>
// kernel: tpu_custom_call.1
= control target key start
LH: loop header
LB: loop body
LE: loop exit
PB: predicated region body
PF: predicated region fallthrough
CT: control target
= control target key end

     0   :  { %7 = vsyncpa [#allocation4], 0  ;;  %s169_s0 = inlined_call_operand.hbm [shape: f32[4], index: 0, kind: input, shape index: {}]   ;;  %s170_s1 = inlined_call_operand.vmem [shape: f32[1,5], index: 1, kind: input, shape index: {}]   ;;  %s171_s2 = inlined_call_operand.hbm [shape: f32[4,4], index: 2, kind: output, shape index: {}]  }
   0x1   :  { %8 = vsyncpa [#allocation3], 0  ;;  %s88_s11 = scalar_lea.hbm %s169_s0, 16 }
   0x2   :  { %p89_p0 = scmp.ne.s32.totalorder %s169_s0, %s88_s11  ;;  %p92_p1 = scmp.lt.u32.totalorder %s88_s11, %s169_s0 }
   0x4   :  { %p94_p2 = pnand %p92_p1, %p89_p0 }
   0x6   :  { %97 = shalt.err (!%p94_p2)
}
   0x7   :  { %s124_s16 = smov [#allocation2]  }
   0x8   :  { %16 = dma.hbm_to_smem %s169_s0, 16, %s124_s16, [#allocation4]  }
   0x9   :  { %120 = dma.done.wait [#allocation4], 16  }
   0xa   :  { %121 = vsyncadd [#allocation4], 4294967280 }
   0xb   :  { %22 = sfence }
   0xc   :  { %s24_s19 = sld [smem:[#allocation2]]  ;;  %v37_v0 = vlaneseq  ;;  %s83_s20 = sld [smem:[#allocation2 + $0x2]]  ;;  %v23_v2 = vld [vmem:[%s170_s1] sm:$0x1]  ;;  %vm58_vm0 = vcmask 1040384   ;;  %vm60_vm1 = vcmask 1041408  }
   0xd   :  { %s82_s21 = sld [smem:[#allocation2 + $0x1]]  ;;  %s84_s22 = sld [smem:[#allocation2 + $0x3]]  ;;  %vm62_vm2 = vcmask 1042432   ;;  %vm65_vm3 = vcmask 27648  }
   0xe   :  { %v38_v1 = vshrl.u32 %v37_v0, 7  ;;  %s125_s0 = smov 127   ;;  %s126_s1 = smov [#allocation5]  }
   0xf   :  { %s73_s25 = sshll.u32 %s126_s1, 4  ;;  %s74_s25 = int_to_ptr.vmem [resolvable:$true] %s73_s25 }
  0x10   :  { %v39_v3 = vsub.s32 0, %v38_v1  ;;  %s98_s26 = scalar_lea.vmem %s74_s25, 64  ;;  %p103_p4 = scmp.lt.s32.totalorder %s74_s25, %s74_s25 }
  0x11   :  { %p99_p3 = scmp.ne.s32.totalorder %s74_s25, %s98_s26  ;;  %p104_p5 = scmp.lt.s32.totalorder %s98_s26, %s98_s26 }
  0x12   :  { %v32_v4 = vstv %s24_s19  ;;  %v34_v6 = vstv %s83_s20 }
  0x13   :  { %v33_v5 = vmul.f32 %v32_v4, %v23_v2  ;;  %v28_v7 = vstv %s82_s21  ;;  %v35_v8 = vmul.f32 %v34_v6, %v23_v2  ;;  %v30_v9 = vstv %s84_s22  ;;  %p105_p6 = por %p104_p5, %p103_p4 }
  0x14   :  { %v29_v11 = vmul.f32 %v28_v7, %v23_v2  ;;  %v31_v12 = vmul.f32 %v30_v9, %v23_v2 }
  0x15   :  { %v46_v10 = vrot.slane %v33_v5, %v39_v3  ;;  %v54_v13 = vrot.slane %v35_v8, %v39_v3  ;;  %p106_p7 = pnand %p105_p6, %p99_p3 }
  0x16   :  { %v40_v14 = vrot.slane %v31_v12, %v39_v3 }
  0x17   :  { %47 = vrot.lane.b32.xlu0 %v46_v10, %s125_s0 }
  0x18   :  { %v59_v15 = vsel %vm58_vm0, %v29_v11, %v40_v14 }
  0x1b   :  { %55 = vrot.lane.b32.xlu0 %v54_v13, %s125_s0 }
  0x89   :  { %v48_v16 = vpop.permute.xlu0 %47 }
  0x8a   :  { %v61_v17 = vsel %vm60_vm1, %v59_v15, %v48_v16 }
  0x8d   :  { %v56_v18 = vpop.permute.xlu0 %55 }
  0x8e   :  { %v63_v19 = vsel %vm62_vm2, %v61_v17, %v56_v18 }
  0x8f   :  { %v64_v20 = vmax.f32 %v63_v19, 0.0 }
  0x91   :  { %66 = vst.msk [vmem:[#allocation5] sm:$0xf] %vm65_vm3, %v64_v20 }
  0x92   :  { %109 = shalt.err (!%p106_p7)
}
  0x93   :  { %s110_s29 = scalar_lea.hbm %s171_s2, 64 }
  0x94   :  { %p111_p8 = scmp.ne.s32.totalorder %s171_s2, %s110_s29  ;;  %p114_p9 = scmp.lt.u32.totalorder %s110_s29, %s171_s2 }
  0x96   :  { %p116_p10 = pnand %p114_p9, %p111_p8 }
  0x98   :  { %119 = shalt.err (!%p116_p10)
}
  0x99   :  { %76 = dma.vmem_to_hbm [thread:$0]  %s74_s25, 64, %s171_s2, [#allocation3]  }
  0x9a   :  { %122 = dma.done.wait [#allocation3], 64  }
  0x9b   :  { %123 = vsyncadd [#allocation3], 4294967232 }
  0x9c   :  { %80 = vsyncpa [#allocation3], 1 }
  0x9d   :  { %81 = vsyncpa [#allocation4], 1 }

</bundles_post_ra>
